<compile_context>
chip_gen: v7x
topology: tpu7x:2x2x1
jax: 0.10.0
libtpu: 0.0.40
codegen_flags: <defaults>
</compile_context>

<pallas_src>
import functools

import jax
import jax.numpy as jnp
from jax.experimental import pallas as pl
from jax.experimental.pallas import tpu as pltpu


def _dwconv1d_kernel(x_ref, wdw_ref, wpw_ref, bias_ref, o_ref, *, single_tile):
    # x_ref   : (C, L)        per-batch input slab (resident across time tiles)
    # wdw_ref : (C, K)        depthwise taps (one row of taps per channel)
    # wpw_ref : (C_out, C)    pointwise (1x1 conv) weights
    # bias_ref: (C_out, 1)    fused bias  (Wpw @ b_dw + b_pw), f32
    # o_ref   : (C_out, TL)   output tile, TL == L_out or a 128-multiple tile
    k_taps = wdw_ref.shape[1]
    tl = o_ref.shape[1]

    if single_tile:
        x = x_ref[...].astype(jnp.float32)                     # (C, L)
    else:
        # TL is a multiple of 128 here -> aligned lane-window load.
        start = pl.multiple_of(pl.program_id(1) * tl, 128)
        x = x_ref[:, pl.ds(start, tl + k_taps - 1)].astype(jnp.float32)

    wdw = wdw_ref[...].astype(jnp.float32)                     # (C, K)

    # Depthwise conv: K shifted lane-slices, FMA on the VPU, f32 accumulate.
    acc = x[:, 0:tl] * wdw[:, 0:1]
    for k in range(1, k_taps):                                 # K small & static -> unrolled
        acc = acc + x[:, k:k + tl] * wdw[:, k:k + 1]

    # Pointwise 1x1 conv: one MXU matmul over channels, lane-dense output tile.
    out = jnp.dot(wpw_ref[...].astype(jnp.float32), acc,
                  preferred_element_type=jnp.float32)          # (C_out, TL)
    out = out + bias_ref[...]                                  # fused (dw + pw) bias

    o_ref[...] = out.astype(o_ref.dtype)                       # single store per tile


def depthwise_conv1d(x, w_dw, b_dw, w_pw, b_pw):
    """DepthwiseConv1d.forward.

    x    : (B, dim_in, L)           PyTorch Conv1d input layout
    w_dw : (dim_out, 1, K)          nn.Conv1d(dim_in, dim_out, K, groups=dim_in).weight
    b_dw : (dim_out,)
    w_pw : (dim_out, dim_out, 1)    nn.Conv1d(dim_out, dim_out, 1).weight
    b_pw : (dim_out,)
    returns (B, dim_out, L - K + 1)
    """
    B, c_in, L = x.shape
    c_out, _, K = w_dw.shape
    assert c_out % c_in == 0, "grouped conv with groups=dim_in needs dim_out % dim_in == 0"
    assert K <= L, "kernel_size must not exceed the sequence length (no padding)"
    mult = c_out // c_in
    l_out = L - K + 1

    # groups=dim_in == per-output-channel depthwise conv over an input whose channel g
    # is replicated `mult` times (identity / no copy in the charformer case dim_in==dim_out).
    x_dw = x if mult == 1 else jnp.repeat(x, mult, axis=1)          # (B, c_out, L)

    wdw2 = w_dw[:, 0, :]                                            # (c_out, K)
    wpw2 = w_pw[:, :, 0]                                            # (c_out, c_out)
    # Fold the depthwise bias through the 1x1 projection:
    #   Wpw @ (y + b_dw) + b_pw == Wpw @ y + (Wpw @ b_dw + b_pw)
    bias = (jnp.dot(wpw2.astype(jnp.float32),
                    b_dw.astype(jnp.float32).reshape(c_out, 1))
            + b_pw.astype(jnp.float32).reshape(c_out, 1))           # (c_out, 1) f32

    # Time-tile choice: lane-dense 512/256/128 tiles when they evenly divide L_out,
    # otherwise one whole-L_out tile (small / unaligned case).
    tl = l_out
    for cand in (512, 256, 128):
        if l_out % cand == 0:
            tl = cand
            break
    n_t = l_out // tl

    kernel = functools.partial(_dwconv1d_kernel, single_tile=(n_t == 1))

    return pl.pallas_call(
        kernel,
        out_shape=jax.ShapeDtypeStruct((B, c_out, l_out), x.dtype),
        grid=(B, n_t),
        in_specs=[
            # Per-batch input slab; same block across the time axis -> stays resident.
            pl.BlockSpec((None, c_out, L), lambda b, t: (b, 0, 0)),
            # Small weight / bias blocks, constant block index -> fully resident.
            pl.BlockSpec((c_out, K), lambda b, t: (0, 0)),
            pl.BlockSpec((c_out, c_out), lambda b, t: (0, 0)),
            pl.BlockSpec((c_out, 1), lambda b, t: (0, 0)),
        ],
        out_specs=pl.BlockSpec((None, c_out, tl), lambda b, t: (b, 0, t)),
        compiler_params=pltpu.CompilerParams(
            dimension_semantics=("parallel", "arbitrary"),
        ),
    )(x_dw, wdw2, wpw2, bias)


def _reference(x, w_dw, b_dw, w_pw, b_pw):
    """Pure-JAX reference: grouped depthwise conv + bias, then 1x1 conv + bias."""
    B, c_in, L = x.shape
    c_out, _, K = w_dw.shape
    mult = c_out // c_in
    l_out = L - K + 1
    xr = x if mult == 1 else jnp.repeat(x, mult, axis=1)
    dw = jnp.zeros((B, c_out, l_out), jnp.float32)
    for k in range(K):
        dw = dw + xr[:, :, k:k + l_out].astype(jnp.float32) * w_dw[:, 0, k][None, :, None]
    dw = dw + b_dw[None, :, None]
    return jnp.einsum("dc,bcl->bdl", w_pw[:, :, 0].astype(jnp.float32), dw) \
        + b_pw[None, :, None]


if __name__ == "__main__":
    key = jax.random.PRNGKey(0)
    k1, k2, k3, k4, k5, k6 = jax.random.split(key, 6)

    # Small shapes consistent with charformer usage (dim_in == dim_out == dim).
    B, dim_in, dim_out, L, K = 2, 32, 32, 16, 3
    x = jax.random.normal(k1, (B, dim_in, L), dtype=jnp.float32)
    w_dw = jax.random.normal(k2, (dim_out, 1, K), dtype=jnp.float32) * 0.2
    b_dw = jax.random.normal(k3, (dim_out,), dtype=jnp.float32) * 0.1
    w_pw = jax.random.normal(k4, (dim_out, dim_out, 1), dtype=jnp.float32) * 0.2
    b_pw = jax.random.normal(k5, (dim_out,), dtype=jnp.float32) * 0.1

    out = jax.block_until_ready(depthwise_conv1d(x, w_dw, b_dw, w_pw, b_pw))
    ref = _reference(x, w_dw, b_dw, w_pw, b_pw)
    assert out.shape == (B, dim_out, L - K + 1)
    err = float(jnp.max(jnp.abs(out - ref)))
    assert jnp.allclose(out, ref, rtol=2e-2, atol=2e-2), f"max abs err {err}"

    # Secondary check: exercises the lane-dense multi-tile time path
    # (L_out = 1024 -> two 512-wide output tiles per batch element).
    L2 = 1026
    x2 = jax.random.normal(k6, (B, dim_in, L2), dtype=jnp.float32)
    out2 = jax.block_until_ready(depthwise_conv1d(x2, w_dw, b_dw, w_pw, b_pw))
    ref2 = _reference(x2, w_dw, b_dw, w_pw, b_pw)
    err2 = float(jnp.max(jnp.abs(out2 - ref2)))
    assert jnp.allclose(out2, ref2, rtol=2e-2, atol=2e-2), f"max abs err {err2}"

    print("KERNEL_OK")
</pallas_src>

<mosaic_0001>
module attributes {stable_mosaic.version = 11 : i64} {
  func.func @_dwconv1d_kernel(%arg0: i32, %arg1: i32, %arg2: memref<1x32x16xf32, #tpu.memory_space<vmem>>, %arg3: memref<32x3xf32, #tpu.memory_space<vmem>>, %arg4: memref<32x32xf32, #tpu.memory_space<vmem>>, %arg5: memref<32x1xf32, #tpu.memory_space<vmem>>, %arg6: memref<1x32x14xf32, #tpu.memory_space<vmem>>) attributes {dimension_semantics = [#tpu.dimension_semantics<parallel>, #tpu.dimension_semantics<arbitrary>], iteration_bounds = array<i64: 2, 1>, scalar_prefetch = 0 : i64, scratch_operands = 0 : i64, tpu.core_type = #tpu.core_type<tc>, window_params = [{transform_indices = @transform_0, window_bounds = array<i64: 1, 32, 16>}, {pipeline_mode = #tpu.pipeline_mode<synchronous>, transform_indices = @transform_1, window_bounds = array<i64: 32, 3>}, {pipeline_mode = #tpu.pipeline_mode<synchronous>, transform_indices = @transform_2, window_bounds = array<i64: 32, 32>}, {pipeline_mode = #tpu.pipeline_mode<synchronous>, transform_indices = @transform_3, window_bounds = array<i64: 32, 1>}, {transform_indices = @transform_4, window_bounds = array<i64: 1, 32, 14>}]} {
    %c0 = arith.constant 0 : index
    %c0_0 = arith.constant 0 : index
    %c0_1 = arith.constant 0 : index
    %0 = vector.load %arg2[%c0, %c0_0, %c0_1] : memref<1x32x16xf32, #tpu.memory_space<vmem>>, vector<1x32x16xf32>
    %1 = vector.shape_cast %0 : vector<1x32x16xf32> to vector<32x16xf32>
    %c0_2 = arith.constant 0 : index
    %c0_3 = arith.constant 0 : index
    %2 = vector.load %arg3[%c0_2, %c0_3] : memref<32x3xf32, #tpu.memory_space<vmem>>, vector<32x3xf32>
    %3 = vector.extract_strided_slice %1 {offsets = [0, 0], sizes = [32, 14], strides = [1, 1]} : vector<32x16xf32> to vector<32x14xf32>
    %4 = vector.extract_strided_slice %2 {offsets = [0, 0], sizes = [32, 1], strides = [1, 1]} : vector<32x3xf32> to vector<32x1xf32>
    %5 = vector.broadcast %4 : vector<32x1xf32> to vector<32x14xf32>
    %6 = arith.mulf %3, %5 : vector<32x14xf32>
    %7 = vector.extract_strided_slice %1 {offsets = [0, 1], sizes = [32, 14], strides = [1, 1]} : vector<32x16xf32> to vector<32x14xf32>
    %8 = vector.extract_strided_slice %2 {offsets = [0, 1], sizes = [32, 1], strides = [1, 1]} : vector<32x3xf32> to vector<32x1xf32>
    %9 = vector.broadcast %8 : vector<32x1xf32> to vector<32x14xf32>
    %10 = arith.mulf %7, %9 : vector<32x14xf32>
    %11 = arith.addf %6, %10 : vector<32x14xf32>
    %12 = vector.extract_strided_slice %1 {offsets = [0, 2], sizes = [32, 14], strides = [1, 1]} : vector<32x16xf32> to vector<32x14xf32>
    %13 = vector.extract_strided_slice %2 {offsets = [0, 2], sizes = [32, 1], strides = [1, 1]} : vector<32x3xf32> to vector<32x1xf32>
    %14 = vector.broadcast %13 : vector<32x1xf32> to vector<32x14xf32>
    %15 = arith.mulf %12, %14 : vector<32x14xf32>
    %16 = arith.addf %11, %15 : vector<32x14xf32>
    %c0_4 = arith.constant 0 : index
    %c0_5 = arith.constant 0 : index
    %17 = vector.load %arg4[%c0_4, %c0_5] : memref<32x32xf32, #tpu.memory_space<vmem>>, vector<32x32xf32>
    %cst = arith.constant dense<0.000000e+00> : vector<32x14xf32>
    %18 = tpu.matmul %17, %16, %cst {dimension_numbers = #tpu.dot_dimension_numbers<[1], [0], [0], [1], [0, 0, 1, 1], [], []>} : vector<32x32xf32>, vector<32x14xf32>, vector<32x14xf32> -> vector<32x14xf32>
    %c0_6 = arith.constant 0 : index
    %c0_7 = arith.constant 0 : index
    %19 = vector.load %arg5[%c0_6, %c0_7] : memref<32x1xf32, #tpu.memory_space<vmem>>, vector<32x1xf32>
    %20 = vector.broadcast %19 : vector<32x1xf32> to vector<32x14xf32>
    %21 = arith.addf %18, %20 : vector<32x14xf32>
    %c0_8 = arith.constant 0 : index
    %c0_9 = arith.constant 0 : index
    %c0_10 = arith.constant 0 : index
    %22 = vector.load %arg6[%c0_8, %c0_9, %c0_10] : memref<1x32x14xf32, #tpu.memory_space<vmem>>, vector<1x32x14xf32>
    %23 = vector.shape_cast %22 : vector<1x32x14xf32> to vector<32x14xf32>
    %24 = vector.shape_cast %21 : vector<32x14xf32> to vector<1x32x14xf32>
    tpu.vector_store %arg6[%c0_8, %c0_9, %c0_10], %24 {strides = array<i32>} : memref<1x32x14xf32, #tpu.memory_space<vmem>>, vector<1x32x14xf32>,
    return
  }
  func.func @transform_0(%arg0: i32, %arg1: i32) -> (i32, i32, i32) {
    %c0_i32 = arith.constant 0 : i32
    %c0_i32_0 = arith.constant 0 : i32
    %c0_i32_1 = arith.constant 0 : i32
    return %arg0, %c0_i32, %c0_i32_0 : i32, i32, i32
  }
  func.func @transform_1(%arg0: i32, %arg1: i32) -> (i32, i32) {
    %c0_i32 = arith.constant 0 : i32
    %c0_i32_0 = arith.constant 0 : i32
    %c0_i32_1 = arith.constant 0 : i32
    return %c0_i32, %c0_i32_0 : i32, i32
  }
  func.func @transform_2(%arg0: i32, %arg1: i32) -> (i32, i32) {
    %c0_i32 = arith.constant 0 : i32
    %c0_i32_0 = arith.constant 0 : i32
    %c0_i32_1 = arith.constant 0 : i32
    return %c0_i32, %c0_i32_0 : i32, i32
  }
  func.func @transform_3(%arg0: i32, %arg1: i32) -> (i32, i32) {
    %c0_i32 = arith.constant 0 : i32
    %c0_i32_0 = arith.constant 0 : i32
    %c0_i32_1 = arith.constant 0 : i32
    return %c0_i32, %c0_i32_0 : i32, i32
  }
  func.func @transform_4(%arg0: i32, %arg1: i32) -> (i32, i32, i32) {
    %c0_i32 = arith.constant 0 : i32
    %c0_i32_0 = arith.constant 0 : i32
    return %arg0, %c0_i32, %arg1 : i32, i32, i32
  }
}

</mosaic_0001>

<bundles_post_ra>
// kernel: tpu_custom_call.1
= control target key start
LH: loop header
LB: loop body
LE: loop exit
PB: predicated region body
PF: predicated region fallthrough
CT: control target
= control target key end

     0   :  { %s679_s15 = smov 0   ;;  %s681_s16 = smov 0   ;;  %s763_s0 = inlined_call_operand.vmem [shape: f32[2,32,16], index: 0, kind: input, shape index: {}]   ;;  %s764_s1 = inlined_call_operand.vmem [shape: f32[32,3], index: 1, kind: input, shape index: {}]   ;;  %s765_s2 = inlined_call_operand.vmem [shape: f32[32,32], index: 2, kind: input, shape index: {}]   ;;  %s766_s3 = inlined_call_operand.vmem [shape: f32[32,1], index: 3, kind: input, shape index: {}]   ;;  %s767_s4 = inlined_call_operand.vmem [shape: f32[2,32,14], index: 4, kind: output, shape index: {}]  }
   0x1   :  { %s683_s17 = smov 0  }
   0x2 LB: > { %s26_s18 = sadd.s32 1, %s643_s16  ;;  %p542_p0 = scmp.ge.s32.totalorder %s647_s17, 1  ;;  %s647_s17 = sphi %s683_s17, %s14_s17   ;;  %s643_s16 = sphi %s681_s16, %s769_s16   ;;  %s639_s15 = sphi %s679_s15, %s768_s15  }
   0x3   : > { %p28_p1 = scmp.ge.s32.totalorder %s26_s18, 2  ;;  %p176_p2 = scmp.lt.s32.totalorder %s647_s17, 3 }
   0x5   : > { %s771_s18 = smov (%p28_p1, %s26_s18), 0  ;;  %p177_p3 = pnand %p542_p0, %p176_p2 }
   0x6   : > { %v222_v0 = vld [vmem:[%s764_s1] sm:$0xff] (!%p177_p3)  ;;  %v649_v1 = vmov (!%p177_p3), 2   ;;  %v650_v2 = vmov (!%p177_p3), 1   ;;  %v223_v3 = vld [vmem:[%s764_s1 + $0x8] sm:$0xff] (!%p177_p3)  ;;  %v224_v4 = vld [vmem:[%s764_s1 + $0x10] sm:$0xff] (!%p177_p3)  ;;  %v651_v6 = vmov (!%p177_p3), 0  }
   0x7   : > { %180 = sbr.rel (%p177_p3) target bundleno = 493 (0x1ed), region = 36  ;;  %619 = vset.pattern.permute.xlu1 (!%p177_p3), %v649_v1  ;;  %618 = vset.pattern.permute.xlu0 (!%p177_p3), %v650_v2  ;;  %v225_v5 = vld [vmem:[%s764_s1 + $0x18] sm:$0xff] (!%p177_p3)  ;;  %p205_p4 = scmp.lt.s32.totalorder (!%p177_p3), %s639_s15, 1  ;;  %v330_v23 = vld [vmem:[%s765_s2] sm:$0xff] (!%p177_p3)  ;;  %vm358_vm0 = vcmask (!%p177_p3), 261120   ;;  %v332_v24 = vld [vmem:[%s765_s2 + $0x10] sm:$0xff] (!%p177_p3) }
   0x8   : > { %291 = vperm.xlu1 (!%p177_p3), %619, %v222_v0   ;;  %251 = vperm.xlu0 (!%p177_p3), %618, %v222_v0   ;;  %s652_s5 = smov (!%p177_p3), 127   ;;  %s653_s6 = smov (!%p177_p3), 126   ;;  %v334_v29 = vld [vmem:[%s766_s3] sm:$0xff] (!%p177_p3)  ;;  %v335_v30 = vld [vmem:[%s766_s3 + $0x8] sm:$0xff] (!%p177_p3)  ;;  %v336_v31 = vld [vmem:[%s766_s3 + $0x10] sm:$0xff] (!%p177_p3)  ;;  %vm456_vm1 = vcmask (!%p177_p3), 113664  }
   0x9   : > { %571 = vmatprep.mubr.msk.f32.mxu0 (!%p177_p3), %vm358_vm0, %v330_v23  ;;  %574 = vmatprep.mubr.msk.f32.mxu1 (!%p177_p3), %vm358_vm0, %v332_v24  ;;  %v337_v32 = vld [vmem:[%s766_s3 + $0x18] sm:$0xff] (!%p177_p3)  ;;  %v331_v59 = vld [vmem:[%s765_s2 + $0x8] sm:$0xff] (!%p177_p3) }
   0xa   : > { %v333_v60 = vld [vmem:[%s765_s2 + $0x18] sm:$0xff] (!%p177_p3) }
   0xc   : > { %295 = vperm.xlu1 (!%p177_p3), %619, %v223_v3   ;;  %255 = vperm.xlu0 (!%p177_p3), %618, %v223_v3  }
   0xe   : > { %s773_s15 = smov (!%p205_p4, %s639_s15), 1 }
   0xf   : > { %s553_s27 = sshll.u32 %s773_s15, 5 }
  0x10   : > { %259 = vperm.xlu0 %618, %v224_v4   ;;  %620 = vset.pattern.permute.xlu1 %v650_v2  ;;  %s209_s30 = scalar_lea.vmem %s763_s0, %s553_s27 }
  0x11   : > { %263 = vperm.xlu1 %620, %v225_v5   ;;  %v218_v7 = vld [vmem:[%s209_s30] sm:$0xff]  ;;  %v219_v11 = vld [vmem:[%s209_s30 + $0x8] sm:$0xff]  ;;  %v220_v16 = vld [vmem:[%s209_s30 + $0x10] sm:$0xff] }
  0x12   : > { %v221_v18 = vld [vmem:[%s209_s30 + $0x18] sm:$0xff]  ;;  %s217_s30 = scalar_lea.vmem %s767_s4, %s553_s27 }
  0x14   : > { %621 = vset.pattern.permute.xlu0 %v649_v1 }
  0x15   : > { %299 = vperm.xlu0 %621, %v224_v4   ;;  %622 = vset.pattern.permute.xlu1 %v649_v1 }
  0x16   : > { %303 = vperm.xlu1 %622, %v225_v5  }
  0x19   : > { %624 = vset.pattern.permute.xlu0 %v651_v6 }
  0x1a   : > { %623 = vset.pattern.permute.xlu1 %v651_v6  ;;  %233 = vperm.xlu0 %624, %v223_v3  }
  0x1b   : > { %228 = vperm.xlu1 %623, %v222_v0  }
  0x1f   : > { %238 = vperm.xlu1 %623, %v224_v4  }
  0x23   : > { %243 = vperm.xlu1 %623, %v225_v5  }
  0x87   : > { %v292_v8 = vpop.permute.xlu1 %291  ;;  %v252_v9 = vpop.permute.xlu0 %251 }
  0x88   : > { %v266_v10 = vmul.f32 %v252_v9, %v218_v7  ;;  %v306_v13 = vmul.f32 %v292_v8, %v218_v7 }
  0x8a   : > { %274 = vrot.lane.b32.xlu0 %v266_v10, %s652_s5 }
  0x8b   : > { %v256_v12 = vpop.permute.xlu0 %255  ;;  %v296_v14 = vpop.permute.xlu1 %295 }
  0x8c   : > { %v267_v15 = vmul.f32 %v256_v12, %v219_v11  ;;  %v307_v19 = vmul.f32 %v296_v14, %v219_v11 }
  0x8e   : > { %276 = vrot.lane.b32.xlu1 %v267_v15, %s652_s5  ;;  %314 = vrot.lane.b32.xlu0 %v306_v13, %s653_s6 }
  0x8f   : > { %v260_v17 = vpop.permute.xlu0 %259 }
  0x90   : > { %v268_v20 = vmul.f32 %v260_v17, %v220_v16  ;;  %v264_v21 = vpop.permute.xlu1 %263 }
  0x91   : > { %v269_v22 = vmul.f32 %v264_v21, %v221_v18 }
  0x92   : > { %316 = vrot.lane.b32.xlu1 %v307_v19, %s653_s6  ;;  %278 = vrot.lane.b32.xlu0 %v268_v20, %s652_s5 }
  0x94   : > { %v300_v25 = vpop.permute.xlu0 %299 }
  0x95   : > { %v308_v26 = vmul.f32 %v300_v25, %v220_v16  ;;  %v304_v27 = vpop.permute.xlu1 %303 }
  0x96   : > { %280 = vrot.lane.b32.xlu1 %v269_v22, %s652_s5  ;;  %v309_v28 = vmul.f32 %v304_v27, %v221_v18 }
  0x97   : > { %318 = vrot.lane.b32.xlu0 %v308_v26, %s653_s6 }
  0x99   : > { %v234_v35 = vpop.permute.xlu0 %233 }
  0x9a   : > { %320 = vrot.lane.b32.xlu1 %v309_v28, %s653_s6  ;;  %v229_v33 = vpop.permute.xlu1 %228  ;;  %v247_v41 = vmul.f32 %v234_v35, %v219_v11 }
  0x9b   : > { %340 = vperm.xlu0 %624, %v334_v29   ;;  %v246_v40 = vmul.f32 %v229_v33, %v218_v7 }
  0x9e   : > { %345 = vperm.xlu1 %623, %v335_v30   ;;  %v239_v34 = vpop.permute.xlu1 %238 }
  0x9f   : > { %350 = vperm.xlu0 %624, %v336_v31   ;;  %v248_v50 = vmul.f32 %v239_v34, %v220_v16 }
  0xa2   : > { %355 = vperm.xlu1 %623, %v337_v32   ;;  %v244_v36 = vpop.permute.xlu1 %243 }
  0xa3   : > { %v249_v51 = vmul.f32 %v244_v36, %v221_v18 }
  0xfc   : > { %v275_v37 = vpop.permute.xlu0 %274 }
  0xfd   : > { %v286_v42 = vadd.f32 %v275_v37, %v246_v40 }
 0x100   : > { %v277_v38 = vpop.permute.xlu1 %276  ;;  %v315_v39 = vpop.permute.xlu0 %314 }
 0x101   : > { %v287_v43 = vadd.f32 %v277_v38, %v247_v41  ;;  %v326_v46 = vadd.f32 %v315_v39, %v286_v42 }
 0x104   : > { %v317_v44 = vpop.permute.xlu1 %316  ;;  %v279_v45 = vpop.permute.xlu0 %278 }
 0x105   : > { %v327_v47 = vadd.f32 %v317_v44, %v287_v43  ;;  %v288_v53 = vadd.f32 %v279_v45, %v248_v50 }
 0x107   : > { %v577_v48 = vpack.c.bf16 %v327_v47, %v326_v46 }
 0x108   : > { %v281_v49 = vpop.permute.xlu1 %280 }
 0x109   : > { %578 = vmatprep.subr.bf16.mxu0 %v577_v48  ;;  %585 = vmatprep.subr.bf16.mxu1 %v577_v48  ;;  %v319_v52 = vpop.permute.xlu0 %318  ;;  %v289_v54 = vadd.f32 %v281_v49, %v249_v51 }
 0x10a   : > { %580 = vmatpush3.bf16.msra.mxu0 %v577_v48  ;;  %587 = vmatpush3.bf16.msra.mxu1 %v577_v48  ;;  %v328_v56 = vadd.f32 %v319_v52, %v288_v53 }
 0x10c   : > { %v321_v55 = vpop.permute.xlu1 %320 }
 0x10d   : > { %v329_v57 = vadd.f32 %v321_v55, %v289_v54 }
 0x10f   : > { %v581_v58 = vpack.c.bf16 %v329_v57, %v328_v56 }
 0x111   : > { %582 = vmatprep.subr.bf16.mxu0 %v581_v58  ;;  %586 = vmatprep.subr.bf16.mxu1 %v581_v58 }
 0x112   : > { %584 = vmatpush3.bf16.msra.mxu0 %v581_v58  ;;  %588 = vmatpush3.bf16.msra.mxu1 %v581_v58 }
 0x115   : > { %572 = vmatmul.mubr.msk.f32.vlgmr.msra.gmra.mrb[0].mxu0 %vm358_vm0, %v331_v59  ;;  %575 = vmatmul.mubr.msk.f32.vlgmr.msra.gmra.mrb[0].mxu1 %vm358_vm0, %v333_v60 }
 0x11a   : > { %v341_v61 = vpop.permute.xlu0 %340 }
 0x11d   : > { %v346_v62 = vpop.permute.xlu1 %345 }
 0x11e   : > { %v351_v63 = vpop.permute.xlu0 %350 }
 0x121   : > { %v356_v0 = vpop.permute.xlu1 %355 }
 0x1e8   : > { %v573_v1 = vpop.f32.mrb[0].mxu0  ;;  %v576_v2 = vpop.f32.mrb[0].mxu1 }
 0x1e9   : > { %v443_v3 = vadd.f32 %v573_v1, %v346_v62  ;;  %v453_v4 = vadd.f32 %v576_v2, %v356_v0  ;;  %v437_v5 = vpop.f32.mrb[1].mxu0  ;;  %v447_v6 = vpop.f32.mrb[1].mxu1 }
 0x1ea   : > { %v438_v7 = vadd.f32 %v437_v5, %v341_v61  ;;  %v448_v8 = vadd.f32 %v447_v6, %v351_v63 }
 0x1eb   : > { %458 = vst.msk [vmem:[%s217_s30 + $0x8] sm:$0xff] %vm456_vm1, %v443_v3  ;;  %460 = vst.msk [vmem:[%s217_s30 + $0x18] sm:$0xff] %vm456_vm1, %v453_v4 }
 0x1ec   : > { %457 = vst.msk [vmem:[%s217_s30] sm:$0xff] %vm456_vm1, %v438_v7  ;;  %459 = vst.msk [vmem:[%s217_s30 + $0x10] sm:$0xff] %vm456_vm1, %v448_v8 }
 0x1ed PF: > { %s14_s17 = sadd.s32 1, %s647_s17   ;;  %s768_s15 = smov %s643_s16 }
 0x1ee   : > { %p11_p5 = scmp.ge.s32.totalorder %s14_s17, 4   ;;  %s769_s16 = smov %s771_s18 }
 0x1f0   :  { %13 = sbr.rel (!%p11_p5) target bundleno = 2 (0x2), region = 66 }

</bundles_post_ra>
